<compile_context>
chip_gen: v5e
topology: v5e:2x2
jax: 0.10.0
libtpu: 0.0.40
codegen_flags: <defaults>
</compile_context>

<pallas_src>
import functools

import jax
import jax.numpy as jnp
import numpy as np
from jax import lax
from jax.experimental import pallas as pl
from jax.experimental.pallas import tpu as pltpu


# ----------------------------------------------------------------------------
# VMEM budget / tile sizing
# ----------------------------------------------------------------------------
_MAX_TILE_LANES = 32768  # cap per-step lane tile even on 128 MiB-VMEM parts


def _vmem_limit_bytes():
    """Scoped-VMEM request sized per generation (v7x has only 64 MiB/TC)."""
    cap = 64 * 1024 * 1024
    try:
        info = pltpu.get_tpu_info()
        cap = int(getattr(info, "vmem_capacity_bytes", cap) or cap)
    except Exception:
        pass
    # Never request more than ~half of physical (double-buffer headroom):
    # v7x (64 MiB) -> 32 MiB, v5e/v6e (128 MiB) -> 64 MiB.
    return int(min(cap // 2, 96 * 1024 * 1024))


def _pick_tile_lanes(cin, cout, vmem_limit, max_block=None):
    """Lane tile so the double-buffered f32 working set is ~60% of budget."""
    per_lane = 2 * (cin + cout) * 4  # in + out tiles, x2 for double buffering
    tn = int(vmem_limit * 0.6) // max(per_lane, 1)
    tn = max(128, min(tn, _MAX_TILE_LANES))
    if max_block is not None:
        # Round any user-supplied cap down to a multiple of 128 (8,128 rule).
        tn = min(tn, max(128, (int(max_block) // 128) * 128))
    return (tn // 128) * 128


# ----------------------------------------------------------------------------
# Kernels
# ----------------------------------------------------------------------------
def _stats_3d_kernel(x_ref, p_ref):
    # x_ref: (1, Cin, TL) in the original NCW layout (no wrapper transpose).
    # Gram trick: partials are Cout-independent; z is never materialized here.
    x = x_ref[0]
    cin = x.shape[0]
    g = lax.dot_general(x, x, (((1,), (1,)), ((), ())),
                        preferred_element_type=jnp.float32)      # (Cin, Cin)
    s = jnp.sum(x, axis=-1, keepdims=True)                        # (Cin, 1)
    p_ref[0, 0, :, :cin] = g
    p_ref[0, 0, :, cin:] = s


def _stats_fold_kernel(x_ref, p_ref):
    # x_ref: (Cin, TN) -- batch folded into the lane axis (fallback path).
    x = x_ref[...]
    cin = x.shape[0]
    g = lax.dot_general(x, x, (((1,), (1,)), ((), ())),
                        preferred_element_type=jnp.float32)
    s = jnp.sum(x, axis=-1, keepdims=True)
    p_ref[0, :, :cin] = g
    p_ref[0, :, cin:] = s


def _apply_3d_kernel(x_ref, ws_ref, shift_ref, o_ref):
    # out = relu((scale*W) @ x + shift), lane-dense (1, Cout, TL) store.
    z = jnp.dot(ws_ref[...], x_ref[0], preferred_element_type=jnp.float32)
    o_ref[0] = jnp.maximum(z + shift_ref[...], 0.0).astype(o_ref.dtype)


def _apply_fold_kernel(x_ref, ws_ref, shift_ref, o_ref):
    z = jnp.dot(ws_ref[...], x_ref[...], preferred_element_type=jnp.float32)
    o_ref[...] = jnp.maximum(z + shift_ref[...], 0.0).astype(o_ref.dtype)


def _fused_kernel(x_ref, w_ref, gamma_ref, beta_ref, o_ref, *, inv_n, eps):
    # Whole problem in one VMEM tile: conv + batch stats + BN + ReLU fused in
    # a single pallas_call; the intermediate z never leaves VMEM.
    x = x_ref[...]                                                 # (Cin, Np)
    z = jnp.dot(w_ref[...], x, preferred_element_type=jnp.float32)  # (Cout,Np)
    mean = jnp.sum(z, axis=-1, keepdims=True) * inv_n
    e2 = jnp.sum(z * z, axis=-1, keepdims=True) * inv_n
    var = jnp.maximum(e2 - mean * mean, 0.0)       # clamp one-pass variance
    scale = gamma_ref[...] * lax.rsqrt(var + eps)
    shift = beta_ref[...] - mean * scale
    o_ref[...] = jnp.maximum(z * scale + shift, 0.0).astype(o_ref.dtype)


# ----------------------------------------------------------------------------
# Tiny (Cout,)-sized finalize: fold BN scale/shift into the pass-2 weight.
# ----------------------------------------------------------------------------
def _finalize(gram, xsum, w32, gamma, beta, eps, count):
    inv_n = jnp.float32(1.0 / count)
    mean = (w32 @ xsum) * inv_n                                   # (Cout,)
    e2 = jnp.einsum("ci,ij,cj->c", w32, gram, w32) * inv_n        # E[z^2]
    var = jnp.maximum(e2 - mean * mean, 0.0)                      # biased var
    scale = gamma * lax.rsqrt(var + eps)
    shift = (beta - mean * scale).reshape(-1, 1)
    return w32 * scale[:, None], shift


# ----------------------------------------------------------------------------
# Wrapper
# ----------------------------------------------------------------------------
def proj_block_1d(x, w_eff, bias, gamma, beta, *, eps=1e-5, max_block=None):
    """x: (B, Cin, L); w_eff: (Cout, Cin); bias/gamma/beta: (Cout,).

    `bias` is accepted for API parity but has no effect on the output: with
    training-mode BatchNorm immediately after the conv it cancels exactly in
    (y - mean) and leaves the variance unchanged.
    """
    B, Cin, L = x.shape
    Cout = w_eff.shape[0]
    N = B * L
    out_dtype = x.dtype

    w32 = w_eff.astype(jnp.float32)
    gamma32 = gamma.astype(jnp.float32)
    beta32 = beta.astype(jnp.float32)

    vmem_limit = _vmem_limit_bytes()
    tn = _pick_tile_lanes(Cin, Cout, vmem_limit, max_block)

    # ---- path A: native (B, Cin, L) layout, no wrapper transposes --------
    if L % 128 == 0:
        # Largest lane tile (multiple of 128, <= budget cap) dividing L.
        tl = 128
        for k in range(min(tn, L) // 128, 0, -1):
            if L % (128 * k) == 0:
                tl = 128 * k
                break
        n_l = L // tl
        # Keep >=2 grid steps when possible so v7x megacore actually shards.
        if B * n_l < 2 and tl % 256 == 0:
            tl //= 2
            n_l = L // tl
        cparams = pltpu.CompilerParams(
            dimension_semantics=("parallel", "parallel"),
            vmem_limit_bytes=vmem_limit)
        x32 = x.astype(jnp.float32)

        partials = pl.pallas_call(
            _stats_3d_kernel,
            out_shape=jax.ShapeDtypeStruct((B, n_l, Cin, Cin + 1), jnp.float32),
            grid=(B, n_l),
            in_specs=[pl.BlockSpec((1, Cin, tl), lambda b, t: (b, 0, t))],
            out_specs=pl.BlockSpec((1, 1, Cin, Cin + 1),
                                   lambda b, t: (b, t, 0, 0)),
            compiler_params=cparams,
        )(x32)
        gram = jnp.sum(partials[..., :Cin], axis=(0, 1))
        xsum = jnp.sum(partials[..., Cin], axis=(0, 1))
        ws, shift = _finalize(gram, xsum, w32, gamma32, beta32, eps, N)

        return pl.pallas_call(
            _apply_3d_kernel,
            out_shape=jax.ShapeDtypeStruct((B, Cout, L), out_dtype),
            grid=(B, n_l),
            in_specs=[
                pl.BlockSpec((1, Cin, tl), lambda b, t: (b, 0, t)),
                pl.BlockSpec((Cout, Cin), lambda b, t: (0, 0)),
                pl.BlockSpec((Cout, 1), lambda b, t: (0, 0)),
            ],
            out_specs=pl.BlockSpec((1, Cout, tl), lambda b, t: (b, 0, t)),
            compiler_params=cparams,
        )(x32, ws, shift)

    # ---- path B: fold batch into lanes (L < 128 / ragged-L fallback) -----
    x2 = jnp.transpose(x, (1, 0, 2)).reshape(Cin, N).astype(jnp.float32)
    n_pad128 = pl.cdiv(N, 128) * 128

    if n_pad128 <= tn:
        # ---- B1: everything fits one VMEM tile -> single fused call ------
        npad = n_pad128
        if npad != N:
            # Zero pad is exact: 0-columns add nothing to sum / sum-of-squares
            # (count uses the true N) and padded outputs are sliced off below.
            x2 = jnp.pad(x2, ((0, 0), (0, npad - N)))
        fused = functools.partial(_fused_kernel, inv_n=1.0 / N, eps=float(eps))
        out2 = pl.pallas_call(
            fused,
            out_shape=jax.ShapeDtypeStruct((Cout, npad), jnp.float32),
            grid=(1,),
            in_specs=[
                pl.BlockSpec((Cin, npad), lambda i: (0, 0)),
                pl.BlockSpec((Cout, Cin), lambda i: (0, 0)),
                pl.BlockSpec((Cout, 1), lambda i: (0, 0)),
                pl.BlockSpec((Cout, 1), lambda i: (0, 0)),
            ],
            out_specs=pl.BlockSpec((Cout, npad), lambda i: (0, 0)),
            compiler_params=pltpu.CompilerParams(
                dimension_semantics=("arbitrary",),
                vmem_limit_bytes=vmem_limit),
        )(x2, w32, gamma32.reshape(Cout, 1), beta32.reshape(Cout, 1))
    else:
        # ---- B2: two passes, tiled over the fused B*L lane axis ----------
        n_t = pl.cdiv(N, tn)            # >= 2 here by construction
        npad = n_t * tn
        if npad != N:
            x2 = jnp.pad(x2, ((0, 0), (0, npad - N)))
        cparams = pltpu.CompilerParams(
            dimension_semantics=("parallel",),
            vmem_limit_bytes=vmem_limit)
        partials = pl.pallas_call(
            _stats_fold_kernel,
            out_shape=jax.ShapeDtypeStruct((n_t, Cin, Cin + 1), jnp.float32),
            grid=(n_t,),
            in_specs=[pl.BlockSpec((Cin, tn), lambda t: (0, t))],
            out_specs=pl.BlockSpec((1, Cin, Cin + 1), lambda t: (t, 0, 0)),
            compiler_params=cparams,
        )(x2)
        gram = jnp.sum(partials[:, :, :Cin], axis=0)
        xsum = jnp.sum(partials[:, :, Cin], axis=0)
        ws, shift = _finalize(gram, xsum, w32, gamma32, beta32, eps, N)
        out2 = pl.pallas_call(
            _apply_fold_kernel,
            out_shape=jax.ShapeDtypeStruct((Cout, npad), jnp.float32),
            grid=(n_t,),
            in_specs=[
                pl.BlockSpec((Cin, tn), lambda t: (0, t)),
                pl.BlockSpec((Cout, Cin), lambda t: (0, 0)),
                pl.BlockSpec((Cout, 1), lambda t: (0, 0)),
            ],
            out_specs=pl.BlockSpec((Cout, tn), lambda t: (0, t)),
            compiler_params=cparams,
        )(x2, ws, shift)

    out = out2[:, :N].reshape(Cout, B, L).transpose(1, 0, 2)
    return out.astype(out_dtype)


# ----------------------------------------------------------------------------
# Pure-JAX reference (mirrors the PyTorch module's forward, training-mode BN)
# ----------------------------------------------------------------------------
def proj_block_1d_ref(x, w_eff, bias, gamma, beta, eps=1e-5):
    y = jnp.einsum("oi,bil->bol", w_eff, x) + bias[None, :, None]
    mean = jnp.mean(y, axis=(0, 2), keepdims=True)
    var = jnp.mean((y - mean) ** 2, axis=(0, 2), keepdims=True)
    yhat = (y - mean) * lax.rsqrt(var + eps)
    out = yhat * gamma[None, :, None] + beta[None, :, None]
    return jnp.maximum(out, 0.0)


def _make_params(key, cin, cout):
    kv, kb, kg, kbeta = jax.random.split(key, 4)
    fan_in = cin * 1
    bound = 1.0 / np.sqrt(fan_in)
    # Conv1d(in, out, kernel_size=1) weight v: (Cout, Cin, 1)
    v = jax.random.uniform(kv, (cout, cin, 1), minval=-bound, maxval=bound,
                           dtype=jnp.float32)
    bias = jax.random.uniform(kb, (cout,), minval=-bound, maxval=bound,
                              dtype=jnp.float32)
    # weight_norm (dim=0): W = g * v / ||v||, with g initialized to ||v||.
    v_norm = jnp.sqrt(jnp.sum(v * v, axis=(1, 2), keepdims=True))
    w_eff = (v_norm * v / v_norm).reshape(cout, cin)
    gamma = jax.random.uniform(kg, (cout,), minval=0.5, maxval=1.5,
                               dtype=jnp.float32)
    beta = jax.random.uniform(kbeta, (cout,), minval=-0.5, maxval=0.5,
                              dtype=jnp.float32)
    return w_eff, bias, gamma, beta


if __name__ == "__main__":
    key = jax.random.PRNGKey(0)
    k1, k2, k3, kp1, kp2, kp3 = jax.random.split(key, 6)

    # --- 1) module-spec small shapes (B=2, in_dim=4, out_dim=8, L=16) -----
    # Exercises the fully fused single-call path.  PyTorch BN init: gamma=1,
    # beta=0 (weight_norm init handled in _make_params).
    B, Cin, Cout, L = 2, 4, 8, 16
    x1 = jax.random.normal(k1, (B, Cin, L), dtype=jnp.float32)
    w1, b1, _, _ = _make_params(kp1, Cin, Cout)
    g1 = jnp.ones((Cout,), jnp.float32)
    be1 = jnp.zeros((Cout,), jnp.float32)
    out1 = jax.block_until_ready(proj_block_1d(x1, w1, b1, g1, be1))
    ref1 = proj_block_1d_ref(x1, w1, b1, g1, be1)
    np.testing.assert_allclose(np.asarray(out1), np.asarray(ref1),
                               rtol=1e-4, atol=1e-4)

    # --- 2) ragged L fallback, forced multi-tile two-pass path ------------
    x2 = jax.random.normal(k2, (2, 4, 100), dtype=jnp.float32)
    w2, b2, g2, be2 = _make_params(kp2, 4, 8)
    out2 = jax.block_until_ready(
        proj_block_1d(x2, w2, b2, g2, be2, max_block=128))
    ref2 = proj_block_1d_ref(x2, w2, b2, g2, be2)
    np.testing.assert_allclose(np.asarray(out2), np.asarray(ref2),
                               rtol=1e-4, atol=1e-4)

    # --- 3) native NCW layout path (L multiple of 128), forced tiling -----
    x3 = jax.random.normal(k3, (2, 4, 256), dtype=jnp.float32)
    w3, b3, g3, be3 = _make_params(kp3, 4, 8)
    out3 = jax.block_until_ready(
        proj_block_1d(x3, w3, b3, g3, be3, max_block=128))
    ref3 = proj_block_1d_ref(x3, w3, b3, g3, be3)
    np.testing.assert_allclose(np.asarray(out3), np.asarray(ref3),
                               rtol=1e-4, atol=1e-4)

    print("KERNEL_OK")
</pallas_src>

<mosaic_0001>
module attributes {stable_mosaic.version = 11 : i64} {
  func.func @_fused_kernel(%arg0: i32, %arg1: memref<4x128xf32, #tpu.memory_space<vmem>>, %arg2: memref<8x4xf32, #tpu.memory_space<vmem>>, %arg3: memref<8x1xf32, #tpu.memory_space<vmem>>, %arg4: memref<8x1xf32, #tpu.memory_space<vmem>>, %arg5: memref<8x128xf32, #tpu.memory_space<vmem>>) attributes {dimension_semantics = [#tpu.dimension_semantics<arbitrary>], iteration_bounds = array<i64: 1>, scalar_prefetch = 0 : i64, scratch_operands = 0 : i64, tpu.core_type = #tpu.core_type<tc>, window_params = [{pipeline_mode = #tpu.pipeline_mode<synchronous>, transform_indices = @transform_0, window_bounds = array<i64: 4, 128>}, {pipeline_mode = #tpu.pipeline_mode<synchronous>, transform_indices = @transform_1, window_bounds = array<i64: 8, 4>}, {pipeline_mode = #tpu.pipeline_mode<synchronous>, transform_indices = @transform_2, window_bounds = array<i64: 8, 1>}, {pipeline_mode = #tpu.pipeline_mode<synchronous>, transform_indices = @transform_3, window_bounds = array<i64: 8, 1>}, {pipeline_mode = #tpu.pipeline_mode<synchronous>, transform_indices = @transform_4, window_bounds = array<i64: 8, 128>}]} {
    %c0 = arith.constant 0 : index
    %c0_0 = arith.constant 0 : index
    %0 = vector.load %arg1[%c0, %c0_0] : memref<4x128xf32, #tpu.memory_space<vmem>>, vector<4x128xf32>
    %c0_1 = arith.constant 0 : index
    %c0_2 = arith.constant 0 : index
    %1 = vector.load %arg2[%c0_1, %c0_2] : memref<8x4xf32, #tpu.memory_space<vmem>>, vector<8x4xf32>
    %cst = arith.constant dense<0.000000e+00> : vector<8x128xf32>
    %2 = tpu.matmul %1, %0, %cst {dimension_numbers = #tpu.dot_dimension_numbers<[1], [0], [0], [1], [0, 0, 1, 1], [], []>} : vector<8x4xf32>, vector<4x128xf32>, vector<8x128xf32> -> vector<8x128xf32>
    %cst_3 = arith.constant dense<0.000000e+00> : vector<8xf32>
    %3 = vector.multi_reduction <add>, %2, %cst_3 [1] : vector<8x128xf32> to vector<8xf32>
    %4 = vector.shape_cast %3 : vector<8xf32> to vector<8x1xf32>
    %cst_4 = arith.constant 3.125000e-02 : f32
    %5 = vector.broadcast %cst_4 : f32 to vector<8x1xf32>
    %6 = arith.mulf %4, %5 : vector<8x1xf32>
    %7 = arith.mulf %2, %2 : vector<8x128xf32>
    %cst_5 = arith.constant dense<0.000000e+00> : vector<8xf32>
    %8 = vector.multi_reduction <add>, %7, %cst_5 [1] : vector<8x128xf32> to vector<8xf32>
    %9 = vector.shape_cast %8 : vector<8xf32> to vector<8x1xf32>
    %cst_6 = arith.constant 3.125000e-02 : f32
    %10 = vector.broadcast %cst_6 : f32 to vector<8x1xf32>
    %11 = arith.mulf %9, %10 : vector<8x1xf32>
    %12 = arith.mulf %6, %6 : vector<8x1xf32>
    %13 = arith.subf %11, %12 : vector<8x1xf32>
    %cst_7 = arith.constant 0.000000e+00 : f32
    %14 = vector.broadcast %cst_7 : f32 to vector<8x1xf32>
    %15 = arith.maximumf %13, %14 : vector<8x1xf32>
    %c0_8 = arith.constant 0 : index
    %c0_9 = arith.constant 0 : index
    %16 = vector.load %arg3[%c0_8, %c0_9] : memref<8x1xf32, #tpu.memory_space<vmem>>, vector<8x1xf32>
    %cst_10 = arith.constant 9.99999974E-6 : f32
    %17 = vector.broadcast %cst_10 : f32 to vector<8x1xf32>
    %18 = arith.addf %15, %17 : vector<8x1xf32>
    %19 = math.rsqrt %18 : vector<8x1xf32>
    %20 = arith.mulf %16, %19 : vector<8x1xf32>
    %c0_11 = arith.constant 0 : index
    %c0_12 = arith.constant 0 : index
    %21 = vector.load %arg4[%c0_11, %c0_12] : memref<8x1xf32, #tpu.memory_space<vmem>>, vector<8x1xf32>
    %22 = arith.mulf %6, %20 : vector<8x1xf32>
    %23 = arith.subf %21, %22 : vector<8x1xf32>
    %24 = vector.broadcast %20 : vector<8x1xf32> to vector<8x128xf32>
    %25 = arith.mulf %2, %24 : vector<8x128xf32>
    %26 = vector.broadcast %23 : vector<8x1xf32> to vector<8x128xf32>
    %27 = arith.addf %25, %26 : vector<8x128xf32>
    %cst_13 = arith.constant 0.000000e+00 : f32
    %28 = vector.broadcast %cst_13 : f32 to vector<8x128xf32>
    %29 = arith.maximumf %27, %28 : vector<8x128xf32>
    %c0_14 = arith.constant 0 : index
    %c0_15 = arith.constant 0 : index
    %30 = vector.load %arg5[%c0_14, %c0_15] : memref<8x128xf32, #tpu.memory_space<vmem>>, vector<8x128xf32>
    tpu.vector_store %arg5[%c0_14, %c0_15], %29 {strides = array<i32>} : memref<8x128xf32, #tpu.memory_space<vmem>>, vector<8x128xf32>,
    return
  }
  func.func @transform_0(%arg0: i32) -> (i32, i32) {
    %c0_i32 = arith.constant 0 : i32
    %c0_i32_0 = arith.constant 0 : i32
    %c0_i32_1 = arith.constant 0 : i32
    return %c0_i32, %c0_i32_0 : i32, i32
  }
  func.func @transform_1(%arg0: i32) -> (i32, i32) {
    %c0_i32 = arith.constant 0 : i32
    %c0_i32_0 = arith.constant 0 : i32
    %c0_i32_1 = arith.constant 0 : i32
    return %c0_i32, %c0_i32_0 : i32, i32
  }
  func.func @transform_2(%arg0: i32) -> (i32, i32) {
    %c0_i32 = arith.constant 0 : i32
    %c0_i32_0 = arith.constant 0 : i32
    %c0_i32_1 = arith.constant 0 : i32
    return %c0_i32, %c0_i32_0 : i32, i32
  }
  func.func @transform_3(%arg0: i32) -> (i32, i32) {
    %c0_i32 = arith.constant 0 : i32
    %c0_i32_0 = arith.constant 0 : i32
    %c0_i32_1 = arith.constant 0 : i32
    return %c0_i32, %c0_i32_0 : i32, i32
  }
  func.func @transform_4(%arg0: i32) -> (i32, i32) {
    %c0_i32 = arith.constant 0 : i32
    %c0_i32_0 = arith.constant 0 : i32
    %c0_i32_1 = arith.constant 0 : i32
    return %c0_i32, %c0_i32_0 : i32, i32
  }
}

</mosaic_0001>

<bundles_post_ra>
// kernel: tpu_custom_call.1
= control target key start
LH: loop header
LB: loop body
LE: loop exit
PB: predicated region body
PF: predicated region fallthrough
CT: control target
= control target key end

     0   :  { %vm24_vm0 = vcmask 1043456   ;;  %vm20_vm1 = vcmask 31744   ;;  %s180_s0 = inlined_call_operand.vmem [shape: f32[4,128], index: 0, kind: input, shape index: {}]   ;;  %s181_s1 = inlined_call_operand.vmem [shape: f32[8,4], index: 1, kind: input, shape index: {}]   ;;  %s182_s2 = inlined_call_operand.vmem [shape: f32[8,1], index: 2, kind: input, shape index: {}]   ;;  %s183_s3 = inlined_call_operand.vmem [shape: f32[8,1], index: 3, kind: input, shape index: {}]   ;;  %s184_s4 = inlined_call_operand.hbm [shape: f32[8,128], index: 4, kind: output, shape index: {}]  }
   0x1   :  { %v18_v0 = vld [vmem:[%s180_s0] sm:$0xf] }
   0x2   :  { %v19_v1 = vld [vmem:[%s181_s1] sm:$0xff]  ;;  %104 = vmatpush.msk.msra.mxu0 %vm24_vm0, %v18_v0 }
   0x3   :  { %9 = vsyncpa [#allocation3], 0  ;;  %105 = vmatmul.msk.f32.vlgmr.msra.gmra.mxu0 %vm20_vm1, %v19_v1  ;;  %v138_v4 = vmov 0   ;;  %v58_v18 = vld [vmem:[%s182_s2] sm:$0xff]  ;;  %s139_s21 = smov [#allocation2]   ;;  %s95_s24 = sshll.u32 %s184_s4, 4  ;;  %s96_s24 = int_to_ptr.hbm [resolvable:$true] %s95_s24 }
   0x4   :  { %108 = vset.pattern.permute.xlu1 %v138_v4  ;;  %109 = vset.pattern.permute.xlu0 %v138_v4  ;;  %v71_v23 = vld [vmem:[%s183_s3] sm:$0xff]  ;;  %s93_s22 = sshll.u32 %s139_s21, 4  ;;  %s94_s22 = int_to_ptr.vmem [resolvable:$true] %s93_s22 }
  0x80   :  { %v45_v2 = vpop.f32.mrf.mxu0 }
  0x81   :  { %48 = vadd.xlane.f32.xlu0 %v45_v2  ;;  %v51_v3 = vmul.f32 %v45_v2, %v45_v2 }
  0x89   :  { %52 = vadd.xlane.f32.xlu0 %v51_v3 }
  0xf4   :  { %v49_v5 = vpop.xlane.xlu0 %48 }
  0xf5   :  { %v50_v6 = vmul.f32 0.03125, %v49_v5 }
  0xf7   :  { %v55_v8 = vmul.f32 %v50_v6, %v50_v6 }
  0xfc   :  { %v53_v7 = vpop.xlane.xlu0 %52 }
  0xfd   :  { %v54_v9 = vmul.f32 0.03125, %v53_v7 }
  0xff   :  { %v56_v10 = vsub.f32 %v54_v9, %v55_v8 }
 0x101   :  { %v57_v11 = vmax.f32 %v56_v10, 0.0 }
 0x103   :  { %v59_v12 = vadd.f32 1e-05, %v57_v11 }
 0x105   :  { %110 = vrsqrt.f32 %v59_v12  ;;  %vm66_vm3 = vweird.f32 %v59_v12 }
 0x10b   :  { %v111_v13 = vpop.eup %110 }
 0x10c   :  { %v61_v14 = vmul.f32 %v111_v13, %v59_v12  ;;  %vm67_vm2 = vweird.f32 %v111_v13 }
 0x10d   :  { %vm68_vm4 = vmor %vm66_vm3, %vm67_vm2 }
 0x10e   :  { %v62_v15 = vmul.f32 %v111_v13, %v61_v14 }
 0x110   :  { %v63_v16 = vmul.f32 0.5, %v62_v15 }
 0x112   :  { %v64_v17 = vsub.f32 1.5, %v63_v16 }
 0x114   :  { %v65_v19 = vmul.f32 %v111_v13, %v64_v17 }
 0x116   :  { %v69_v20 = vsel %vm68_vm4, %v111_v13, %v65_v19 }
 0x117   :  { %v70_v21 = vmul.f32 %v69_v20, %v58_v18 }
 0x119   :  { %76 = vperm.xlu1 %108, %v70_v21   ;;  %v72_v22 = vmul.f32 %v70_v21, %v50_v6 }
 0x11b   :  { %v73_v24 = vsub.f32 %v71_v23, %v72_v22 }
 0x121   :  { %82 = vperm.xlu1 %108, %v73_v24  }
 0x18b   :  { %v77_v25 = vpop.permute.xlu1 %76 }
 0x18c   :  { %v79_v26 = vmul.f32 %v77_v25, %v45_v2 }
 0x193   :  { %v83_v27 = vpop.permute.xlu1 %82 }
 0x194   :  { %v85_v28 = vadd.f32 %v83_v27, %v79_v26 }
 0x196   :  { %v86_v29 = vmax.f32 %v85_v28, 0.0 }
 0x198   :  { %87 = vst [vmem:[#allocation2] sm:$0xff] %v86_v29 }
 0x199   :  { %98 = dma.vmem_to_hbm [thread:$0]  %s94_s22, 128, %s96_s24, [#allocation3]  }
 0x19a   :  { %136 = dma.done.wait [#allocation3], 128  }
 0x19b   :  { %137 = vsyncadd [#allocation3], 4294967168 }
 0x19c   :  { %103 = vsyncpa [#allocation3], 1 }

</bundles_post_ra>
